<compile_context>
chip_gen: v7x
topology: tpu7x:2x2x1
jax: 0.10.0
libtpu: 0.0.40
codegen_flags: <defaults>
</compile_context>

<pallas_src>
import math

import jax
import jax.numpy as jnp
from jax.experimental import pallas as pl
from jax.experimental.pallas import tpu as pltpu


def _cve_kernel(x_ref, m_ref, b_ref, o_ref):
    # x_ref: (tile, Kc)     f32  Kc-padded fold of scalar inputs per output row
    # m_ref: (Kc, D_lane)   f32  block-diagonal copies of W[:, 0] (zero-padded)
    # b_ref: (1, D_lane)    f32  bias tiled K times (zero in lane padding)
    # o_ref: (tile, D_lane)      lane-dense output slab
    # One MXU contraction instead of K rank-1 VPU multiply-adds; tanh -> EUP.
    acc = jnp.dot(x_ref[...], m_ref[...], preferred_element_type=jnp.float32)
    o_ref[...] = jnp.tanh(acc + b_ref[...]).astype(o_ref.dtype)


def _round_up(a, m):
    return ((a + m - 1) // m) * m


def continuous_value_embedding(x, weight, bias, *,
                               out_dtype=jnp.float32,
                               out_block_bytes=4 * 1024 * 1024):
    """x: (B, T), weight: (d_model, 1), bias: (d_model,) -> (B, T, d_model)."""
    B, T = x.shape
    d_model = weight.shape[0]
    N = B * T

    # Fold factor: K consecutive rows folded into the lane axis so the output
    # block width K*d_model is a multiple of 128 (unmasked full-lane stores).
    K = 128 // math.gcd(d_model, 128)
    if K > 16:
        # Fold would be too wide (gcd < 8): fall back to K=1 but keep the
        # output lane-dense by zero-padding the lane dim to a 128 multiple.
        K = 1
        D_real = d_model
        D_lane = _round_up(d_model, 128)
    else:
        D_real = K * d_model            # already a multiple of 128
        D_lane = D_real
    Kc = _round_up(K, 8)                # padded contraction dim for the MXU

    # Row tiling: biggest block within the VMEM budget (multiple of 8).  Keep
    # the grid step count EVEN when there is enough work so the single
    # "parallel" axis shards evenly across v7x's two TensorCores.
    n_fold = -(-N // K)
    out_row_bytes = D_lane * jnp.dtype(out_dtype).itemsize
    tile_budget = max(8, (out_block_bytes // out_row_bytes) // 8 * 8)
    if n_fold <= 8:
        tile = 8
    else:
        g = max(2, -(-n_fold // tile_budget))
        if g % 2:
            g += 1
        tile = max(8, _round_up(-(-n_fold // g), 8))
    n_pad = _round_up(n_fold, tile)
    grid = n_pad // tile

    # Inputs: zero-padded K-folded x rows (extra Kc-K cols are exact zeros);
    # block-diagonal weight; bias tiled K times.  Zero pads contribute 0.0.
    x_flat = x.reshape(-1).astype(jnp.float32)
    x_flat = jnp.pad(x_flat, (0, n_pad * K - N))
    x_fold = x_flat.reshape(n_pad, K)
    if Kc > K:
        x_fold = jnp.pad(x_fold, ((0, 0), (0, Kc - K)))

    w_row = weight.reshape(1, d_model).astype(jnp.float32)
    m_real = jnp.kron(jnp.eye(K, dtype=jnp.float32), w_row)       # (K, D_real)
    m = jnp.zeros((Kc, D_lane), jnp.float32).at[:K, :D_real].set(m_real)
    b_real = jnp.tile(bias.reshape(1, d_model).astype(jnp.float32), (1, K))
    b_row = jnp.zeros((1, D_lane), jnp.float32).at[:, :D_real].set(b_real)

    out = pl.pallas_call(
        _cve_kernel,
        out_shape=jax.ShapeDtypeStruct((n_pad, D_lane), out_dtype),
        grid_spec=pl.GridSpec(
            grid=(grid,),
            in_specs=[
                pl.BlockSpec((tile, Kc), lambda i: (i, 0)),
                pl.BlockSpec((Kc, D_lane), lambda i: (0, 0)),
                pl.BlockSpec((1, D_lane), lambda i: (0, 0)),
            ],
            out_specs=pl.BlockSpec((tile, D_lane), lambda i: (i, 0)),
        ),
        compiler_params=pltpu.CompilerParams(
            dimension_semantics=("parallel",),
            # Load-bearing on v5e (16 MiB scoped default); safe on v7x (64 MiB).
            vmem_limit_bytes=32 * 1024 * 1024,
        ),
        cost_estimate=pl.CostEstimate(
            flops=2 * n_pad * Kc * D_lane,
            transcendentals=n_pad * D_lane,
            bytes_accessed=(4 * n_pad * Kc                      # x read
                            + 4 * (Kc + 1) * D_lane             # params
                            + n_pad * D_lane * jnp.dtype(out_dtype).itemsize),
        ),
    )(x_fold, m, b_row)

    # Un-fold back to (B, T, d_model).  Row-major-contiguous view; should fuse
    # into the consumer (see header note if it materializes).
    if D_lane == D_real:
        return out.reshape(n_pad * K, d_model)[:N].reshape(B, T, d_model)
    # K == 1 fallback: trim the zero-padded lanes.
    return out[:N, :d_model].reshape(B, T, d_model)


if __name__ == "__main__":
    key = jax.random.PRNGKey(0)
    kx, kw, kb, kx2, kx3 = jax.random.split(key, 5)

    # Small shapes consistent with the module: batch=2, seq=8, d_model=32.
    B, T, d_model = 2, 8, 32
    # nn.Linear(1, d_model) init: uniform(-1, 1) since 1/sqrt(in_features)=1.
    weight = jax.random.uniform(kw, (d_model, 1), jnp.float32, -1.0, 1.0)
    bias = jax.random.uniform(kb, (d_model,), jnp.float32, -1.0, 1.0)
    x = jax.random.normal(kx, (B, T), jnp.float32)

    out = jax.block_until_ready(continuous_value_embedding(x, weight, bias))
    ref = jnp.tanh(x[..., None] * weight[:, 0][None, None, :] + bias[None, None, :])
    assert out.shape == (B, T, d_model)
    assert jnp.allclose(out, ref, atol=1e-5), "mismatch vs reference"

    # Ragged / non-divisible shape exercising padding + a K=8 fold.
    B2, T2, d2 = 3, 5, 48
    w2 = jax.random.uniform(kw, (d2, 1), jnp.float32, -1.0, 1.0)
    b2 = jax.random.uniform(kb, (d2,), jnp.float32, -1.0, 1.0)
    x2 = jax.random.normal(kx2, (B2, T2), jnp.float32)
    out2 = jax.block_until_ready(continuous_value_embedding(x2, w2, b2))
    ref2 = jnp.tanh(x2[..., None] * w2[:, 0][None, None, :] + b2[None, None, :])
    assert out2.shape == (B2, T2, d2)
    assert jnp.allclose(out2, ref2, atol=1e-5), "mismatch vs reference (ragged)"

    # d_model with gcd(d_model,128) < 8: exercises the lane-padded K=1 path
    # and the even (2-step) grid.
    B3, T3, d3 = 3, 7, 50
    w3 = jax.random.uniform(kw, (d3, 1), jnp.float32, -1.0, 1.0)
    b3 = jax.random.uniform(kb, (d3,), jnp.float32, -1.0, 1.0)
    x3 = jax.random.normal(kx3, (B3, T3), jnp.float32)
    out3 = jax.block_until_ready(continuous_value_embedding(x3, w3, b3))
    ref3 = jnp.tanh(x3[..., None] * w3[:, 0][None, None, :] + b3[None, None, :])
    assert out3.shape == (B3, T3, d3)
    assert jnp.allclose(out3, ref3, atol=1e-5), "mismatch vs reference (lane-pad)"

    print("KERNEL_OK")
</pallas_src>

<mosaic_0001>
module attributes {stable_mosaic.version = 11 : i64} {
  func.func @_cve_kernel(%arg0: i32, %arg1: memref<8x8xf32, #tpu.memory_space<vmem>>, %arg2: memref<8x128xf32, #tpu.memory_space<vmem>>, %arg3: memref<1x128xf32, #tpu.memory_space<vmem>>, %arg4: memref<8x128xf32, #tpu.memory_space<vmem>>) attributes {dimension_semantics = [#tpu.dimension_semantics<parallel>], iteration_bounds = array<i64: 1>, scalar_prefetch = 0 : i64, scratch_operands = 0 : i64, tpu.core_type = #tpu.core_type<tc>, window_params = [{transform_indices = @transform_0, window_bounds = array<i64: 8, 8>}, {pipeline_mode = #tpu.pipeline_mode<synchronous>, transform_indices = @transform_1, window_bounds = array<i64: 8, 128>}, {pipeline_mode = #tpu.pipeline_mode<synchronous>, transform_indices = @transform_2, window_bounds = array<i64: 1, 128>}, {transform_indices = @transform_3, window_bounds = array<i64: 8, 128>}]} {
    %c0 = arith.constant 0 : index
    %c0_0 = arith.constant 0 : index
    %0 = vector.load %arg1[%c0, %c0_0] : memref<8x8xf32, #tpu.memory_space<vmem>>, vector<8x8xf32>
    %c0_1 = arith.constant 0 : index
    %c0_2 = arith.constant 0 : index
    %1 = vector.load %arg2[%c0_1, %c0_2] : memref<8x128xf32, #tpu.memory_space<vmem>>, vector<8x128xf32>
    %cst = arith.constant dense<0.000000e+00> : vector<8x128xf32>
    %2 = tpu.matmul %0, %1, %cst {dimension_numbers = #tpu.dot_dimension_numbers<[1], [0], [0], [1], [0, 0, 1, 1], [], []>} : vector<8x8xf32>, vector<8x128xf32>, vector<8x128xf32> -> vector<8x128xf32>
    %c0_3 = arith.constant 0 : index
    %c0_4 = arith.constant 0 : index
    %3 = vector.load %arg3[%c0_3, %c0_4] : memref<1x128xf32, #tpu.memory_space<vmem>>, vector<1x128xf32>
    %4 = vector.broadcast %3 : vector<1x128xf32> to vector<8x128xf32>
    %5 = arith.addf %2, %4 : vector<8x128xf32>
    %6 = math.tanh %5 : vector<8x128xf32>
    %c0_5 = arith.constant 0 : index
    %c0_6 = arith.constant 0 : index
    %7 = vector.load %arg4[%c0_5, %c0_6] : memref<8x128xf32, #tpu.memory_space<vmem>>, vector<8x128xf32>
    tpu.vector_store %arg4[%c0_5, %c0_6], %6 {strides = array<i32>} : memref<8x128xf32, #tpu.memory_space<vmem>>, vector<8x128xf32>,
    return
  }
  func.func @transform_0(%arg0: i32) -> (i32, i32) {
    %c0_i32 = arith.constant 0 : i32
    %c0_i32_0 = arith.constant 0 : i32
    return %arg0, %c0_i32 : i32, i32
  }
  func.func @transform_1(%arg0: i32) -> (i32, i32) {
    %c0_i32 = arith.constant 0 : i32
    %c0_i32_0 = arith.constant 0 : i32
    %c0_i32_1 = arith.constant 0 : i32
    return %c0_i32, %c0_i32_0 : i32, i32
  }
  func.func @transform_2(%arg0: i32) -> (i32, i32) {
    %c0_i32 = arith.constant 0 : i32
    %c0_i32_0 = arith.constant 0 : i32
    %c0_i32_1 = arith.constant 0 : i32
    return %c0_i32, %c0_i32_0 : i32, i32
  }
  func.func @transform_3(%arg0: i32) -> (i32, i32) {
    %c0_i32 = arith.constant 0 : i32
    %c0_i32_0 = arith.constant 0 : i32
    return %arg0, %c0_i32 : i32, i32
  }
}

</mosaic_0001>

<bundles_post_ra>
// kernel: tpu_custom_call.1
= control target key start
LH: loop header
LB: loop body
LE: loop exit
PB: predicated region body
PF: predicated region fallthrough
CT: control target
= control target key end

     0   :  { %8 = vsyncpa [#allocation3], 0  ;;  %s292_s0 = inlined_call_operand.hbm [shape: f32[8,8], index: 0, kind: input, shape index: {}]   ;;  %s293_s1 = inlined_call_operand.hbm [shape: f32[8,128], index: 1, kind: input, shape index: {}]   ;;  %s294_s2 = inlined_call_operand.vmem [shape: f32[1,128], index: 2, kind: input, shape index: {}]   ;;  %s295_s3 = inlined_call_operand.hbm [shape: f32[8,128], index: 3, kind: output, shape index: {}]  }
   0x1   :  { %9 = vsyncpa [#allocation6], 0 }
   0x2   :  { %10 = vsyncpa [#allocation4], 0  ;;  %s228_s12 = smov [#allocation2]   ;;  %s229_s14 = smov [#allocation5]  }
   0x3   :  { %s17_s13 = sshll.u32 %s228_s12, 4  ;;  %s27_s15 = sshll.u32 %s229_s14, 4  ;;  %s18_s13 = int_to_ptr.vmem [resolvable:$true] %s17_s13  ;;  %s28_s15 = int_to_ptr.vmem [resolvable:$true] %s27_s15 }
   0x4   :  { %s156_s18 = scalar_lea.hbm %s292_s0, 128 }
   0x5   :  { %p157_p0 = scmp.ne.s32.totalorder %s292_s0, %s156_s18  ;;  %p160_p1 = scmp.lt.u32.totalorder %s156_s18, %s292_s0 }
   0x7   :  { %p162_p2 = pnand %p160_p1, %p157_p0 }
   0x9   :  { %165 = shalt.err (!%p162_p2)
}
   0xa   :  { %s166_s23 = scalar_lea.vmem %s18_s13, 128  ;;  %p171_p4 = scmp.lt.s32.totalorder %s18_s13, %s18_s13 }
   0xb   :  { %p167_p3 = scmp.ne.s32.totalorder %s18_s13, %s166_s23  ;;  %p172_p5 = scmp.lt.s32.totalorder %s166_s23, %s166_s23 }
   0xd   :  { %p173_p6 = por %p172_p5, %p171_p4 }
   0xf   :  { %p174_p7 = pnand %p173_p6, %p167_p3 }
  0x11   :  { %177 = shalt.err (!%p174_p7)
}
  0x12   :  { %20 = dma.hbm_to_vmem [thread:$0]  %s292_s0, 128, %s18_s13, [#allocation3]  }
  0x13   :  { %s178_s28 = scalar_lea.hbm %s293_s1, 128 }
  0x14   :  { %p179_p8 = scmp.ne.s32.totalorder %s293_s1, %s178_s28  ;;  %p182_p9 = scmp.lt.u32.totalorder %s178_s28, %s293_s1 }
  0x16   :  { %p184_p10 = pnand %p182_p9, %p179_p8 }
  0x18   :  { %187 = shalt.err (!%p184_p10)
}
  0x19   :  { %s188_s6 = scalar_lea.vmem %s28_s15, 128  ;;  %p193_p12 = scmp.lt.s32.totalorder %s28_s15, %s28_s15 }
  0x1a   :  { %p189_p11 = scmp.ne.s32.totalorder %s28_s15, %s188_s6  ;;  %p194_p13 = scmp.lt.s32.totalorder %s188_s6, %s188_s6 }
  0x1c   :  { %p195_p0 = por %p194_p13, %p193_p12 }
  0x1e   :  { %p196_p1 = pnand %p195_p0, %p189_p11 }
  0x20   :  { %199 = shalt.err (!%p196_p1)
}
  0x21   :  { %30 = dma.hbm_to_vmem [thread:$0]  %s293_s1, 128, %s28_s15, [#allocation6]  }
  0x22   :  { %222 = dma.done.wait [#allocation3], 128  }
  0x23   :  { %223 = vsyncadd [#allocation3], 4294967168 }
  0x24   :  { %224 = dma.done.wait [#allocation6], 128  }
  0x25   :  { %225 = vsyncadd [#allocation6], 4294967168  ;;  %v230_v0 = vmov 0.0   ;;  %vm231_vm0 = vmmov 0   ;;  %vm48_vm1 = vcmask 64512   ;;  %v40_v1 = vld [vmem:[#allocation5] sm:$0xff] }
  0x26   :  { %144 = vmatprep.subr.mxu0 %v230_v0  ;;  %146 = vmatprep.mubr.msk.f32.mxu0 %vm231_vm0, %v230_v0  ;;  %v39_v2 = vld [vmem:[#allocation2] sm:$0xff]  ;;  %s232_s1 = smov [#allocation7]  }
  0x27   :  { %145 = vmatpush3.msra.mxu0 %v40_v1  ;;  %v140_v3 = vld [vmem:[%s294_s2] ss:$0 sm:$0xff]  ;;  %s130_s10 = sshll.u32 %s232_s1, 4  ;;  %s131_s10 = int_to_ptr.vmem [resolvable:$true] %s130_s10 }
  0x28   :  { %147 = vmatmul.mubr.msk.f32.vlgmr.msra.gmra.mrb[0].mxu0 %vm48_vm1, %v39_v2  ;;  %s200_s11 = scalar_lea.vmem %s131_s10, 128  ;;  %p205_p3 = scmp.lt.s32.totalorder %s131_s10, %s131_s10 }
  0x29   :  { %p201_p2 = scmp.ne.s32.totalorder %s131_s10, %s200_s11  ;;  %p206_p4 = scmp.lt.s32.totalorder %s200_s11, %s200_s11 }
  0x2b   :  { %p207_p5 = por %p206_p4, %p205_p3 }
  0x2d   :  { %p208_p6 = pnand %p207_p5, %p201_p2 }
  0xfb   :  { %v118_v4 = vpop.f32.mrb[0].mxu0 }
  0xfc   :  { %v119_v5 = vadd.f32 %v140_v3, %v118_v4  ;;  %v148_v6 = vpop.f32.mrb[1].mxu0 }
  0xfe   :  { %154 = vtanh.f32 %v119_v5 }
 0x108   :  { %v155_v7 = vpop.eup %154 }
 0x109   :  { %123 = vst [vmem:[#allocation7] sm:$0xff] %v155_v7 }
 0x10a   :  { %211 = shalt.err (!%p208_p6)
}
 0x10b   :  { %s212_s2 = scalar_lea.hbm %s295_s3, 128 }
 0x10c   :  { %p213_p7 = scmp.ne.s32.totalorder %s295_s3, %s212_s2  ;;  %p216_p8 = scmp.lt.u32.totalorder %s212_s2, %s295_s3 }
 0x10e   :  { %p218_p9 = pnand %p216_p8, %p213_p7 }
 0x110   :  { %221 = shalt.err (!%p218_p9)
}
 0x111   :  { %133 = dma.vmem_to_hbm [thread:$0]  %s131_s10, 128, %s295_s3, [#allocation4]  }
 0x112   :  { %226 = dma.done.wait [#allocation4], 128  }
 0x113   :  { %227 = vsyncadd [#allocation4], 4294967168 }
 0x114   :  { %137 = vsyncpa [#allocation3], 1 }
 0x115   :  { %138 = vsyncpa [#allocation6], 1 }
 0x116   :  { %139 = vsyncpa [#allocation4], 1 }

</bundles_post_ra>
